<compile_context>
chip_gen: v7x
topology: tpu7x:2x2x1
jax: 0.10.0
libtpu: 0.0.40
codegen_flags: <defaults>
</compile_context>

<pallas_src>
import functools

import jax
import jax.numpy as jnp
from jax import lax
from jax.experimental import pallas as pl
from jax.experimental.pallas import tpu as pltpu

INPUT_SIZE = 9
HIDDEN = 128
B_PAD = 8  # one sublane tile


def _seq2seq_kernel(T_enc, T_dec, Bp,
                    x_ref, h0_ref, wih_ref, w_ref, b_ref, out_ref):
    """All tensors live fully in VMEM (tiny shapes).

    x_ref  : ((T_enc+T_dec)*Bp, 9)  bf16  (enc rows then dec rows; time-major, batch inner)
    h0_ref : (Bp, 128)  f32
    wih_ref: (9, 256)   bf16  [:, :128]=W_ih_enc^T   [:, 128:256]=W_ih_dec^T
    w_ref  : (128, 384) bf16  [:, :128]=W_hh_enc^T   [:, 128:256]=W_hh_dec^T
                              [:, 256:384]=W_fc^T zero-padded to 128 lanes
    b_ref  : (1, 384)   f32   [:, :128]=b_enc(ih+hh) [:, 128:256]=b_dec(ih+hh)
                              [:, 256:384]=b_fc zero-padded
    out_ref: (T_dec*Bp, 128) f32  (lane-dense; real output is [:, :9])
    """
    # ---- phase 0: input projections for ALL timesteps, one amortized matmul ----
    xw = jnp.dot(x_ref[...], wih_ref[...],
                 preferred_element_type=jnp.float32)          # (128, 256) f32

    b_e = b_ref[:, 0:HIDDEN]
    b_d = b_ref[:, HIDDEN:2 * HIDDEN]
    bfc = b_ref[:, 2 * HIDDEN:3 * HIDDEN]

    # ---- encoder recurrence: only W_hh_enc live; fully unrolled (static T) ----
    whh_e = w_ref[:, 0:HIDDEN]                                # (128, 128) bf16
    h = h0_ref[...].astype(jnp.bfloat16)                      # (Bp, 128)
    for t in range(T_enc):
        pre = (xw[t * Bp:(t + 1) * Bp, 0:HIDDEN] + b_e
               + jnp.dot(h, whh_e, preferred_element_type=jnp.float32))
        h = jnp.tanh(pre).astype(jnp.bfloat16)

    # ---- decoder recurrence: hidden states kept in registers ----
    whh_d = w_ref[:, HIDDEN:2 * HIDDEN]                       # (128, 128) bf16
    hs = []
    for t in range(T_dec):
        r0 = (T_enc + t) * Bp
        pre = (xw[r0:r0 + Bp, HIDDEN:2 * HIDDEN] + b_d
               + jnp.dot(h, whh_d, preferred_element_type=jnp.float32))
        h = jnp.tanh(pre).astype(jnp.bfloat16)
        hs.append(h)

    # ---- fc for all steps at once + one lane-dense bulk store ----
    h_slab = jnp.concatenate(hs, axis=0)                      # (T_dec*Bp, 128) bf16
    wfc = w_ref[:, 2 * HIDDEN:3 * HIDDEN]                     # (128, 128) bf16 (zero-padded)
    y = jnp.dot(h_slab, wfc, preferred_element_type=jnp.float32) + bfc
    out_ref[...] = y.astype(out_ref.dtype)


def prepare_params(params):
    """One-time weight re-layout: transpose, fuse biases, pack into 3 slabs, cast to bf16."""
    bf = jnp.bfloat16
    # (9, 256): input projections for encoder | decoder
    wih_pack = jnp.concatenate(
        [params["enc_w_ih"].T, params["dec_w_ih"].T], axis=1).astype(bf)
    # (128, 384): W_hh_enc | W_hh_dec | W_fc (lane-padded to 128)
    wfc_pad = jnp.zeros((HIDDEN, HIDDEN), jnp.float32).at[:, :INPUT_SIZE].set(
        params["fc_w"].T)
    w_big = jnp.concatenate(
        [params["enc_w_hh"].T, params["dec_w_hh"].T, wfc_pad], axis=1).astype(bf)
    # (1, 384): fused biases (kept in f32, added to the f32 accumulators)
    b_e = params["enc_b_ih"] + params["enc_b_hh"]
    b_d = params["dec_b_ih"] + params["dec_b_hh"]
    bfc_pad = jnp.zeros((HIDDEN,), jnp.float32).at[:INPUT_SIZE].set(params["fc_b"])
    b_big = jnp.concatenate([b_e, b_d, bfc_pad])[None, :].astype(jnp.float32)
    return {"wih": wih_pack, "w": w_big, "b": b_big}


@jax.jit
def seq2seq_forward(enc_input, enc_hidden, dec_input, prepared):
    """PyTorch-equivalent forward.

    enc_input : (B, T_enc, 9)
    enc_hidden: (1, B, 128)
    dec_input : (B, T_dec, 9)
    returns   : (T_dec, B, 9)   (same as the PyTorch module)
    """
    B, T_enc, _ = enc_input.shape
    _, T_dec, _ = dec_input.shape
    pad = B_PAD - B

    # pad batch to one sublane tile, go time-major, flatten (T, Bp) -> T*Bp, pack enc|dec.
    enc_x = jnp.pad(enc_input, ((0, pad), (0, 0), (0, 0)))
    dec_x = jnp.pad(dec_input, ((0, pad), (0, 0), (0, 0)))
    enc_x = jnp.transpose(enc_x, (1, 0, 2)).reshape(T_enc * B_PAD, INPUT_SIZE)
    dec_x = jnp.transpose(dec_x, (1, 0, 2)).reshape(T_dec * B_PAD, INPUT_SIZE)
    x_pack = jnp.concatenate([enc_x, dec_x], axis=0).astype(jnp.bfloat16)
    h0 = jnp.pad(enc_hidden[0], ((0, pad), (0, 0))).astype(jnp.float32)  # (Bp,128)

    args = (x_pack, h0, prepared["wih"], prepared["w"], prepared["b"])

    flops = (2 * (T_enc + T_dec) * B_PAD * INPUT_SIZE * 2 * HIDDEN   # input projections
             + 2 * (T_enc + T_dec) * B_PAD * HIDDEN * HIDDEN         # recurrence
             + 2 * T_dec * B_PAD * HIDDEN * HIDDEN)                  # fc
    transcendentals = (T_enc + T_dec) * B_PAD * HIDDEN               # tanh
    bytes_accessed = (x_pack.size * 2 + h0.size * 4
                      + prepared["wih"].size * 2 + prepared["w"].size * 2
                      + prepared["b"].size * 4
                      + T_dec * B_PAD * HIDDEN * 4)

    vmem_spec = pl.BlockSpec(memory_space=pltpu.MemorySpace.VMEM)
    kernel = functools.partial(_seq2seq_kernel, T_enc, T_dec, B_PAD)
    out = pl.pallas_call(
        kernel,
        out_shape=jax.ShapeDtypeStruct((T_dec * B_PAD, HIDDEN), jnp.float32),
        in_specs=[vmem_spec] * len(args),
        out_specs=vmem_spec,
        cost_estimate=pl.CostEstimate(flops=flops,
                                      transcendentals=transcendentals,
                                      bytes_accessed=bytes_accessed),
    )(*args)

    # (T_dec*Bp, 128) -> (T_dec, B, 9): drop batch padding and lane padding.
    return out.reshape(T_dec, B_PAD, HIDDEN)[:, :B, :INPUT_SIZE]


# ---------------- deterministic parameter init (PyTorch-like uniform) --------
def init_params(key):
    k = 1.0 / jnp.sqrt(HIDDEN)

    def u(key, shape):
        return jax.random.uniform(key, shape, jnp.float32, -k, k)

    keys = jax.random.split(key, 11)
    return {
        "enc_w_ih": u(keys[0], (HIDDEN, INPUT_SIZE)),
        "enc_w_hh": u(keys[1], (HIDDEN, HIDDEN)),
        "enc_b_ih": u(keys[2], (HIDDEN,)),
        "enc_b_hh": u(keys[3], (HIDDEN,)),
        "dec_w_ih": u(keys[4], (HIDDEN, INPUT_SIZE)),
        "dec_w_hh": u(keys[5], (HIDDEN, HIDDEN)),
        "dec_b_ih": u(keys[6], (HIDDEN,)),
        "dec_b_hh": u(keys[7], (HIDDEN,)),
        "fc_w": u(keys[8], (INPUT_SIZE, HIDDEN)),
        "fc_b": u(keys[9], (INPUT_SIZE,)),
    }


# ---------------- pure-JAX references (for correctness check) ----------------
def _rnn_ref(x, h0, w_ih, w_hh, b_ih, b_hh, bf16_operands):
    wih_t = w_ih.T
    whh_t = w_hh.T
    if bf16_operands:
        wih_t = wih_t.astype(jnp.bfloat16)
        whh_t = whh_t.astype(jnp.bfloat16)
    b = (b_ih + b_hh)[None, :]

    def step(h, x_t):
        xh = x_t.astype(jnp.bfloat16) if bf16_operands else x_t
        hh = h.astype(jnp.bfloat16) if bf16_operands else h
        pre = (jnp.dot(xh, wih_t, preferred_element_type=jnp.float32)
               + jnp.dot(hh, whh_t, preferred_element_type=jnp.float32) + b)
        h_new = jnp.tanh(pre)
        return h_new, h_new

    h_last, ys = lax.scan(step, h0, x)
    return ys, h_last


def seq2seq_ref(enc_input, enc_hidden, dec_input, p, bf16_operands=False):
    enc_x = jnp.transpose(enc_input, (1, 0, 2))
    dec_x = jnp.transpose(dec_input, (1, 0, 2))
    h0 = enc_hidden[0]
    _, h_t = _rnn_ref(enc_x, h0, p["enc_w_ih"], p["enc_w_hh"],
                      p["enc_b_ih"], p["enc_b_hh"], bf16_operands)
    outs, _ = _rnn_ref(dec_x, h_t, p["dec_w_ih"], p["dec_w_hh"],
                       p["dec_b_ih"], p["dec_b_hh"], bf16_operands)
    fc_w_t = p["fc_w"].T
    if bf16_operands:
        outs = outs.astype(jnp.bfloat16)
        fc_w_t = fc_w_t.astype(jnp.bfloat16)
    return jnp.dot(outs, fc_w_t, preferred_element_type=jnp.float32) + p["fc_b"]


if __name__ == "__main__":
    key = jax.random.PRNGKey(0)
    kp, k1, k2, k3 = jax.random.split(key, 4)

    B, T_ENC, T_DEC = 2, 8, 8
    params = init_params(kp)
    prepared = prepare_params(params)            # one-time weight re-layout / packing

    enc_input = jax.random.normal(k1, (B, T_ENC, INPUT_SIZE), jnp.float32)
    dec_input = jax.random.normal(k2, (B, T_DEC, INPUT_SIZE), jnp.float32)
    enc_hidden = jax.random.normal(k3, (1, B, HIDDEN), jnp.float32)

    out = seq2seq_forward(enc_input, enc_hidden, dec_input, prepared)
    out = jax.block_until_ready(out)
    assert out.shape == (T_DEC, B, INPUT_SIZE)

    # exact-semantics check: reference with matching bf16 MXU operands / f32 accumulate
    ref_bf16 = seq2seq_ref(enc_input, enc_hidden, dec_input, params, bf16_operands=True)
    assert jnp.allclose(out, ref_bf16, atol=5e-3, rtol=0.0), "mismatch vs bf16-matched reference"

    # sanity check: close to the full-f32 reference (bf16 operand rounding only)
    ref_f32 = seq2seq_ref(enc_input, enc_hidden, dec_input, params, bf16_operands=False)
    assert jnp.allclose(out, ref_f32, atol=5e-2, rtol=0.0), "drift vs f32 reference too large"

    print("KERNEL_OK")
</pallas_src>

<mosaic_0001>
module attributes {stable_mosaic.version = 11 : i64} {
  func.func @_seq2seq_kernel(%arg0: memref<128x9xbf16, #tpu.memory_space<vmem>>, %arg1: memref<8x128xf32, #tpu.memory_space<vmem>>, %arg2: memref<9x256xbf16, #tpu.memory_space<vmem>>, %arg3: memref<128x384xbf16, #tpu.memory_space<vmem>>, %arg4: memref<1x384xf32, #tpu.memory_space<vmem>>, %arg5: memref<64x128xf32, #tpu.memory_space<vmem>>) attributes {dimension_semantics = [], scalar_prefetch = 0 : i64, scratch_operands = 0 : i64, tpu.core_type = #tpu.core_type<tc>} {
    %c0 = arith.constant 0 : index
    %c0_0 = arith.constant 0 : index
    %0 = vector.load %arg0[%c0, %c0_0] : memref<128x9xbf16, #tpu.memory_space<vmem>>, vector<128x9xbf16>
    %c0_1 = arith.constant 0 : index
    %c0_2 = arith.constant 0 : index
    %1 = vector.load %arg2[%c0_1, %c0_2] : memref<9x256xbf16, #tpu.memory_space<vmem>>, vector<9x256xbf16>
    %cst = arith.constant dense<0.000000e+00> : vector<128x256xf32>
    %2 = tpu.matmul %0, %1, %cst {dimension_numbers = #tpu.dot_dimension_numbers<[1], [0], [0], [1], [0, 0, 1, 1], [], []>} : vector<128x9xbf16>, vector<9x256xbf16>, vector<128x256xf32> -> vector<128x256xf32>
    %c0_3 = arith.constant 0 : index
    %c0_4 = arith.constant 0 : index
    %3 = vector.load %arg4[%c0_3, %c0_4] : memref<1x384xf32, #tpu.memory_space<vmem>>, vector<1x128xf32>
    %c0_5 = arith.constant 0 : index
    %c128 = arith.constant 128 : index
    %4 = vector.load %arg4[%c0_5, %c128] : memref<1x384xf32, #tpu.memory_space<vmem>>, vector<1x128xf32>
    %c0_6 = arith.constant 0 : index
    %c256 = arith.constant 256 : index
    %5 = vector.load %arg4[%c0_6, %c256] : memref<1x384xf32, #tpu.memory_space<vmem>>, vector<1x128xf32>
    %c0_7 = arith.constant 0 : index
    %c0_8 = arith.constant 0 : index
    %6 = vector.load %arg3[%c0_7, %c0_8] : memref<128x384xbf16, #tpu.memory_space<vmem>>, vector<128x128xbf16>
    %c0_9 = arith.constant 0 : index
    %c0_10 = arith.constant 0 : index
    %7 = vector.load %arg1[%c0_9, %c0_10] : memref<8x128xf32, #tpu.memory_space<vmem>>, vector<8x128xf32>
    %8 = arith.truncf %7 : vector<8x128xf32> to vector<8x128xbf16>
    %9 = vector.extract_strided_slice %2 {offsets = [0, 0], sizes = [8, 128], strides = [1, 1]} : vector<128x256xf32> to vector<8x128xf32>
    %10 = vector.broadcast %3 : vector<1x128xf32> to vector<8x128xf32>
    %11 = arith.addf %9, %10 : vector<8x128xf32>
    %cst_11 = arith.constant dense<0.000000e+00> : vector<8x128xf32>
    %12 = tpu.matmul %8, %6, %cst_11 {dimension_numbers = #tpu.dot_dimension_numbers<[1], [0], [0], [1], [0, 0, 1, 1], [], []>} : vector<8x128xbf16>, vector<128x128xbf16>, vector<8x128xf32> -> vector<8x128xf32>
    %13 = arith.addf %11, %12 : vector<8x128xf32>
    %14 = math.tanh %13 : vector<8x128xf32>
    %15 = arith.truncf %14 : vector<8x128xf32> to vector<8x128xbf16>
    %16 = vector.extract_strided_slice %2 {offsets = [8, 0], sizes = [8, 128], strides = [1, 1]} : vector<128x256xf32> to vector<8x128xf32>
    %17 = vector.broadcast %3 : vector<1x128xf32> to vector<8x128xf32>
    %18 = arith.addf %16, %17 : vector<8x128xf32>
    %cst_12 = arith.constant dense<0.000000e+00> : vector<8x128xf32>
    %19 = tpu.matmul %15, %6, %cst_12 {dimension_numbers = #tpu.dot_dimension_numbers<[1], [0], [0], [1], [0, 0, 1, 1], [], []>} : vector<8x128xbf16>, vector<128x128xbf16>, vector<8x128xf32> -> vector<8x128xf32>
    %20 = arith.addf %18, %19 : vector<8x128xf32>
    %21 = math.tanh %20 : vector<8x128xf32>
    %22 = arith.truncf %21 : vector<8x128xf32> to vector<8x128xbf16>
    %23 = vector.extract_strided_slice %2 {offsets = [16, 0], sizes = [8, 128], strides = [1, 1]} : vector<128x256xf32> to vector<8x128xf32>
    %24 = vector.broadcast %3 : vector<1x128xf32> to vector<8x128xf32>
    %25 = arith.addf %23, %24 : vector<8x128xf32>
    %cst_13 = arith.constant dense<0.000000e+00> : vector<8x128xf32>
    %26 = tpu.matmul %22, %6, %cst_13 {dimension_numbers = #tpu.dot_dimension_numbers<[1], [0], [0], [1], [0, 0, 1, 1], [], []>} : vector<8x128xbf16>, vector<128x128xbf16>, vector<8x128xf32> -> vector<8x128xf32>
    %27 = arith.addf %25, %26 : vector<8x128xf32>
    %28 = math.tanh %27 : vector<8x128xf32>
    %29 = arith.truncf %28 : vector<8x128xf32> to vector<8x128xbf16>
    %30 = vector.extract_strided_slice %2 {offsets = [24, 0], sizes = [8, 128], strides = [1, 1]} : vector<128x256xf32> to vector<8x128xf32>
    %31 = vector.broadcast %3 : vector<1x128xf32> to vector<8x128xf32>
    %32 = arith.addf %30, %31 : vector<8x128xf32>
    %cst_14 = arith.constant dense<0.000000e+00> : vector<8x128xf32>
    %33 = tpu.matmul %29, %6, %cst_14 {dimension_numbers = #tpu.dot_dimension_numbers<[1], [0], [0], [1], [0, 0, 1, 1], [], []>} : vector<8x128xbf16>, vector<128x128xbf16>, vector<8x128xf32> -> vector<8x128xf32>
    %34 = arith.addf %32, %33 : vector<8x128xf32>
    %35 = math.tanh %34 : vector<8x128xf32>
    %36 = arith.truncf %35 : vector<8x128xf32> to vector<8x128xbf16>
    %37 = vector.extract_strided_slice %2 {offsets = [32, 0], sizes = [8, 128], strides = [1, 1]} : vector<128x256xf32> to vector<8x128xf32>
    %38 = vector.broadcast %3 : vector<1x128xf32> to vector<8x128xf32>
    %39 = arith.addf %37, %38 : vector<8x128xf32>
    %cst_15 = arith.constant dense<0.000000e+00> : vector<8x128xf32>
    %40 = tpu.matmul %36, %6, %cst_15 {dimension_numbers = #tpu.dot_dimension_numbers<[1], [0], [0], [1], [0, 0, 1, 1], [], []>} : vector<8x128xbf16>, vector<128x128xbf16>, vector<8x128xf32> -> vector<8x128xf32>
    %41 = arith.addf %39, %40 : vector<8x128xf32>
    %42 = math.tanh %41 : vector<8x128xf32>
    %43 = arith.truncf %42 : vector<8x128xf32> to vector<8x128xbf16>
    %44 = vector.extract_strided_slice %2 {offsets = [40, 0], sizes = [8, 128], strides = [1, 1]} : vector<128x256xf32> to vector<8x128xf32>
    %45 = vector.broadcast %3 : vector<1x128xf32> to vector<8x128xf32>
    %46 = arith.addf %44, %45 : vector<8x128xf32>
    %cst_16 = arith.constant dense<0.000000e+00> : vector<8x128xf32>
    %47 = tpu.matmul %43, %6, %cst_16 {dimension_numbers = #tpu.dot_dimension_numbers<[1], [0], [0], [1], [0, 0, 1, 1], [], []>} : vector<8x128xbf16>, vector<128x128xbf16>, vector<8x128xf32> -> vector<8x128xf32>
    %48 = arith.addf %46, %47 : vector<8x128xf32>
    %49 = math.tanh %48 : vector<8x128xf32>
    %50 = arith.truncf %49 : vector<8x128xf32> to vector<8x128xbf16>
    %51 = vector.extract_strided_slice %2 {offsets = [48, 0], sizes = [8, 128], strides = [1, 1]} : vector<128x256xf32> to vector<8x128xf32>
    %52 = vector.broadcast %3 : vector<1x128xf32> to vector<8x128xf32>
    %53 = arith.addf %51, %52 : vector<8x128xf32>
    %cst_17 = arith.constant dense<0.000000e+00> : vector<8x128xf32>
    %54 = tpu.matmul %50, %6, %cst_17 {dimension_numbers = #tpu.dot_dimension_numbers<[1], [0], [0], [1], [0, 0, 1, 1], [], []>} : vector<8x128xbf16>, vector<128x128xbf16>, vector<8x128xf32> -> vector<8x128xf32>
    %55 = arith.addf %53, %54 : vector<8x128xf32>
    %56 = math.tanh %55 : vector<8x128xf32>
    %57 = arith.truncf %56 : vector<8x128xf32> to vector<8x128xbf16>
    %58 = vector.extract_strided_slice %2 {offsets = [56, 0], sizes = [8, 128], strides = [1, 1]} : vector<128x256xf32> to vector<8x128xf32>
    %59 = vector.broadcast %3 : vector<1x128xf32> to vector<8x128xf32>
    %60 = arith.addf %58, %59 : vector<8x128xf32>
    %cst_18 = arith.constant dense<0.000000e+00> : vector<8x128xf32>
    %61 = tpu.matmul %57, %6, %cst_18 {dimension_numbers = #tpu.dot_dimension_numbers<[1], [0], [0], [1], [0, 0, 1, 1], [], []>} : vector<8x128xbf16>, vector<128x128xbf16>, vector<8x128xf32> -> vector<8x128xf32>
    %62 = arith.addf %60, %61 : vector<8x128xf32>
    %63 = math.tanh %62 : vector<8x128xf32>
    %64 = arith.truncf %63 : vector<8x128xf32> to vector<8x128xbf16>
    %c0_19 = arith.constant 0 : index
    %c128_20 = arith.constant 128 : index
    %65 = vector.load %arg3[%c0_19, %c128_20] : memref<128x384xbf16, #tpu.memory_space<vmem>>, vector<128x128xbf16>
    %66 = vector.extract_strided_slice %2 {offsets = [64, 128], sizes = [8, 128], strides = [1, 1]} : vector<128x256xf32> to vector<8x128xf32>
    %67 = vector.broadcast %4 : vector<1x128xf32> to vector<8x128xf32>
    %68 = arith.addf %66, %67 : vector<8x128xf32>
    %cst_21 = arith.constant dense<0.000000e+00> : vector<8x128xf32>
    %69 = tpu.matmul %64, %65, %cst_21 {dimension_numbers = #tpu.dot_dimension_numbers<[1], [0], [0], [1], [0, 0, 1, 1], [], []>} : vector<8x128xbf16>, vector<128x128xbf16>, vector<8x128xf32> -> vector<8x128xf32>
    %70 = arith.addf %68, %69 : vector<8x128xf32>
    %71 = math.tanh %70 : vector<8x128xf32>
    %72 = arith.truncf %71 : vector<8x128xf32> to vector<8x128xbf16>
    %73 = vector.extract_strided_slice %2 {offsets = [72, 128], sizes = [8, 128], strides = [1, 1]} : vector<128x256xf32> to vector<8x128xf32>
    %74 = vector.broadcast %4 : vector<1x128xf32> to vector<8x128xf32>
    %75 = arith.addf %73, %74 : vector<8x128xf32>
    %cst_22 = arith.constant dense<0.000000e+00> : vector<8x128xf32>
    %76 = tpu.matmul %72, %65, %cst_22 {dimension_numbers = #tpu.dot_dimension_numbers<[1], [0], [0], [1], [0, 0, 1, 1], [], []>} : vector<8x128xbf16>, vector<128x128xbf16>, vector<8x128xf32> -> vector<8x128xf32>
    %77 = arith.addf %75, %76 : vector<8x128xf32>
    %78 = math.tanh %77 : vector<8x128xf32>
    %79 = arith.truncf %78 : vector<8x128xf32> to vector<8x128xbf16>
    %80 = vector.extract_strided_slice %2 {offsets = [80, 128], sizes = [8, 128], strides = [1, 1]} : vector<128x256xf32> to vector<8x128xf32>
    %81 = vector.broadcast %4 : vector<1x128xf32> to vector<8x128xf32>
    %82 = arith.addf %80, %81 : vector<8x128xf32>
    %cst_23 = arith.constant dense<0.000000e+00> : vector<8x128xf32>
    %83 = tpu.matmul %79, %65, %cst_23 {dimension_numbers = #tpu.dot_dimension_numbers<[1], [0], [0], [1], [0, 0, 1, 1], [], []>} : vector<8x128xbf16>, vector<128x128xbf16>, vector<8x128xf32> -> vector<8x128xf32>
    %84 = arith.addf %82, %83 : vector<8x128xf32>
    %85 = math.tanh %84 : vector<8x128xf32>
    %86 = arith.truncf %85 : vector<8x128xf32> to vector<8x128xbf16>
    %87 = vector.extract_strided_slice %2 {offsets = [88, 128], sizes = [8, 128], strides = [1, 1]} : vector<128x256xf32> to vector<8x128xf32>
    %88 = vector.broadcast %4 : vector<1x128xf32> to vector<8x128xf32>
    %89 = arith.addf %87, %88 : vector<8x128xf32>
    %cst_24 = arith.constant dense<0.000000e+00> : vector<8x128xf32>
    %90 = tpu.matmul %86, %65, %cst_24 {dimension_numbers = #tpu.dot_dimension_numbers<[1], [0], [0], [1], [0, 0, 1, 1], [], []>} : vector<8x128xbf16>, vector<128x128xbf16>, vector<8x128xf32> -> vector<8x128xf32>
    %91 = arith.addf %89, %90 : vector<8x128xf32>
    %92 = math.tanh %91 : vector<8x128xf32>
    %93 = arith.truncf %92 : vector<8x128xf32> to vector<8x128xbf16>
    %94 = vector.extract_strided_slice %2 {offsets = [96, 128], sizes = [8, 128], strides = [1, 1]} : vector<128x256xf32> to vector<8x128xf32>
    %95 = vector.broadcast %4 : vector<1x128xf32> to vector<8x128xf32>
    %96 = arith.addf %94, %95 : vector<8x128xf32>
    %cst_25 = arith.constant dense<0.000000e+00> : vector<8x128xf32>
    %97 = tpu.matmul %93, %65, %cst_25 {dimension_numbers = #tpu.dot_dimension_numbers<[1], [0], [0], [1], [0, 0, 1, 1], [], []>} : vector<8x128xbf16>, vector<128x128xbf16>, vector<8x128xf32> -> vector<8x128xf32>
    %98 = arith.addf %96, %97 : vector<8x128xf32>
    %99 = math.tanh %98 : vector<8x128xf32>
    %100 = arith.truncf %99 : vector<8x128xf32> to vector<8x128xbf16>
    %101 = vector.extract_strided_slice %2 {offsets = [104, 128], sizes = [8, 128], strides = [1, 1]} : vector<128x256xf32> to vector<8x128xf32>
    %102 = vector.broadcast %4 : vector<1x128xf32> to vector<8x128xf32>
    %103 = arith.addf %101, %102 : vector<8x128xf32>
    %cst_26 = arith.constant dense<0.000000e+00> : vector<8x128xf32>
    %104 = tpu.matmul %100, %65, %cst_26 {dimension_numbers = #tpu.dot_dimension_numbers<[1], [0], [0], [1], [0, 0, 1, 1], [], []>} : vector<8x128xbf16>, vector<128x128xbf16>, vector<8x128xf32> -> vector<8x128xf32>
    %105 = arith.addf %103, %104 : vector<8x128xf32>
    %106 = math.tanh %105 : vector<8x128xf32>
    %107 = arith.truncf %106 : vector<8x128xf32> to vector<8x128xbf16>
    %108 = vector.extract_strided_slice %2 {offsets = [112, 128], sizes = [8, 128], strides = [1, 1]} : vector<128x256xf32> to vector<8x128xf32>
    %109 = vector.broadcast %4 : vector<1x128xf32> to vector<8x128xf32>
    %110 = arith.addf %108, %109 : vector<8x128xf32>
    %cst_27 = arith.constant dense<0.000000e+00> : vector<8x128xf32>
    %111 = tpu.matmul %107, %65, %cst_27 {dimension_numbers = #tpu.dot_dimension_numbers<[1], [0], [0], [1], [0, 0, 1, 1], [], []>} : vector<8x128xbf16>, vector<128x128xbf16>, vector<8x128xf32> -> vector<8x128xf32>
    %112 = arith.addf %110, %111 : vector<8x128xf32>
    %113 = math.tanh %112 : vector<8x128xf32>
    %114 = arith.truncf %113 : vector<8x128xf32> to vector<8x128xbf16>
    %115 = vector.extract_strided_slice %2 {offsets = [120, 128], sizes = [8, 128], strides = [1, 1]} : vector<128x256xf32> to vector<8x128xf32>
    %116 = vector.broadcast %4 : vector<1x128xf32> to vector<8x128xf32>
    %117 = arith.addf %115, %116 : vector<8x128xf32>
    %cst_28 = arith.constant dense<0.000000e+00> : vector<8x128xf32>
    %118 = tpu.matmul %114, %65, %cst_28 {dimension_numbers = #tpu.dot_dimension_numbers<[1], [0], [0], [1], [0, 0, 1, 1], [], []>} : vector<8x128xbf16>, vector<128x128xbf16>, vector<8x128xf32> -> vector<8x128xf32>
    %119 = arith.addf %117, %118 : vector<8x128xf32>
    %120 = math.tanh %119 : vector<8x128xf32>
    %121 = arith.truncf %120 : vector<8x128xf32> to vector<8x128xbf16>
    %122 = tpu.concatenate %72, %79, %86, %93, %100, %107, %114, %121 in 0 : vector<8x128xbf16>, vector<8x128xbf16>, vector<8x128xbf16>, vector<8x128xbf16>, vector<8x128xbf16>, vector<8x128xbf16>, vector<8x128xbf16>, vector<8x128xbf16> -> vector<64x128xbf16>
    %c0_29 = arith.constant 0 : index
    %c256_30 = arith.constant 256 : index
    %123 = vector.load %arg3[%c0_29, %c256_30] : memref<128x384xbf16, #tpu.memory_space<vmem>>, vector<128x128xbf16>
    %cst_31 = arith.constant dense<0.000000e+00> : vector<64x128xf32>
    %124 = tpu.matmul %122, %123, %cst_31 {dimension_numbers = #tpu.dot_dimension_numbers<[1], [0], [0], [1], [0, 0, 1, 1], [], []>} : vector<64x128xbf16>, vector<128x128xbf16>, vector<64x128xf32> -> vector<64x128xf32>
    %125 = vector.broadcast %5 : vector<1x128xf32> to vector<64x128xf32>
    %126 = arith.addf %124, %125 : vector<64x128xf32>
    %c0_32 = arith.constant 0 : index
    %c0_33 = arith.constant 0 : index
    %127 = vector.load %arg5[%c0_32, %c0_33] : memref<64x128xf32, #tpu.memory_space<vmem>>, vector<64x128xf32>
    tpu.vector_store %arg5[%c0_32, %c0_33], %126 {strides = array<i32>} : memref<64x128xf32, #tpu.memory_space<vmem>>, vector<64x128xf32>,
    return
  }
}

</mosaic_0001>

<bundles_post_ra>
// kernel: seq2seq_forward.1
= control target key start
LH: loop header
LB: loop body
LE: loop exit
PB: predicated region body
PF: predicated region fallthrough
CT: control target
= control target key end

     0   :  { %vm112_vm0 = vcmask 1043456   ;;  %vm113_vm1 = vcmask 1044480   ;;  %v1857_v1 = vmov 0   ;;  %v1858_v2 = vmov 65535   ;;  %s2445_s2 = inlined_call_operand.vmem [shape: bf16[9,256], index: 2, kind: input, shape index: {}]   ;;  %s2446_s0 = inlined_call_operand.vmem [shape: bf16[128,9], index: 0, kind: input, shape index: {}]   ;;  %s2447_s3 = inlined_call_operand.vmem [shape: bf16[128,384], index: 3, kind: input, shape index: {}]   ;;  %s2448_s1 = inlined_call_operand.vmem [shape: f32[8,128], index: 1, kind: input, shape index: {}]   ;;  %s2449_s4 = inlined_call_operand.vmem [shape: f32[1,384], index: 4, kind: input, shape index: {}]   ;;  %s2450_s5 = inlined_call_operand.vmem [shape: f32[64,128], index: 5, kind: output, shape index: {}]  }
   0x1   :  { %v1790_v0 = vld [vmem:[%s2445_s2 + $0x4] ss:$8 sps:$4 sm:$0x1f]   ;;  %186 = vmatprep.mubr.bf16.mxu1 %v1857_v1  ;;  %154 = vmatprep.mubr.bf16.mxu0 %v1857_v1  ;;  %v114_v3 = vsel %vm112_vm0, 4294967295, %v1858_v2  ;;  %vm87_vm2 = vcmask 72704   ;;  %v1859_v10 = vmov 0.0  }
   0x2   :  { %v1792_v4 = vld [vmem:[%s2445_s2] ss:$8 sps:$4 sm:$0x1f]   ;;  %v115_v5 = vsel %vm113_vm1, %v114_v3, 0  ;;  %v1915_v11 = vld [vmem:[%s2447_s3 + $0x18] ss:$12 sps:$4 sm:$0xff]  }
   0x3   :  { %v120_v6 = vand.u32 %v1790_v0, %v115_v5  ;;  %v117_v7 = vand.u32 %v1792_v4, %v115_v5  ;;  %v1793_v8 = vld [vmem:[%s2446_s0 + $0x20] sm:$0xff]   ;;  %v1796_v12 = vld [vmem:[%s2446_s0 + $0x28] sm:$0xff]   ;;  %v1929_v14 = vld [vmem:[%s2447_s3 + $0x30] ss:$12 sps:$4 sm:$0xff]   ;;  %vm1860_vm3 = vmmov 0  }
   0x4   :  { %v1906_v9 = vld [vmem:[%s2447_s3] ss:$12 sps:$4 sm:$0xff]   ;;  %v1936_v15 = vld [vmem:[%s2447_s3 + $0x48] ss:$12 sps:$4 sm:$0xff]   ;;  %v1960_v18 = vld [vmem:[%s2447_s3 + $0x78] ss:$12 sps:$4 sm:$0xff]  }
   0x5   :  { %1784 = vmatprep.subr.bf16.mxu1 %v120_v6  ;;  %122 = vmatprep.subr.bf16.mxu0 %v120_v6  ;;  %v1804_v13 = vld [vmem:[%s2446_s0] sm:$0xff]   ;;  %v1799_v16 = vld [vmem:[%s2446_s0 + $0x30] sm:$0xff]   ;;  %v1802_v19 = vld [vmem:[%s2446_s0 + $0x38] sm:$0xff]  }
   0x6   :  { %1785 = vmatpush1.bf16.msra.mxu1 %v117_v7  ;;  %123 = vmatpush1.bf16.msra.mxu0 %v117_v7  ;;  %v1951_v17 = vld [vmem:[%s2447_s3 + $0x60] ss:$12 sps:$4 sm:$0xff]   ;;  %v1977_v20 = vld [vmem:[%s2447_s3 + $0x90] ss:$12 sps:$4 sm:$0xff]   ;;  %v1987_v21 = vld [vmem:[%s2447_s3 + $0xa8] ss:$12 sps:$4 sm:$0xff]  }
   0x7   :  { %1440 = vmatprep.subr.bf16.mxu1 %v1859_v10  ;;  %1480 = vmatprep.subr.bf16.mxu0 %v1859_v10  ;;  %v238_v22 = vld [vmem:[%s2448_s1] sm:$0xff]  ;;  %v1806_v24 = vld [vmem:[%s2446_s0 + $0x8] sm:$0xff]   ;;  %v1807_v25 = vld [vmem:[%s2446_s0 + $0x10] sm:$0xff]  }
   0x8   :  { %v239_v23 = vpack.c.bf16 %v238_v22, %v238_v22  ;;  %v2036_v29 = vld [vmem:[%s2449_s4 + $0x1] ss:$0 sm:$0xff]  ;;  %v2059_v52 = vld [vmem:[%s2449_s4] ss:$0 sm:$0xff]  ;;  %v1808_v63 = vld [vmem:[%s2446_s0 + $0x18] sm:$0xff]  }
   0x9   :  { %1253 = vmatmul.mubr.msk.bf16.vlgmr.msra.gmra.mrb[0].mxu1 %vm87_vm2, %v1793_v8  ;;  %1249 = vmatmul.mubr.msk.bf16.vlgmr.msra.gmra.mrb[0].mxu0 %vm87_vm2, %v1804_v13 }
   0xa   :  { %1441 = vmatpush3.bf16.msra.mxu1 %v1906_v9  ;;  %194 = vmatprep.mubr.bf16.mxu1 %v1857_v1 }
   0xb   :  { %1442 = vmatprep.subr.bf16.mxu1 %v1859_v10  ;;  %1481 = vmatpush3.bf16.msra.mxu0 %v1906_v9 }
   0xc   :  { %162 = vmatprep.mubr.bf16.mxu0 %v1857_v1  ;;  %1482 = vmatprep.subr.bf16.mxu0 %v1859_v10 }
   0xe   :  { %1443 = vmatpush3.bf16.msra.mxu1 %v1915_v11 }
   0xf   :  { %1444 = vmatprep.subr.bf16.mxu1 %v1859_v10  ;;  %1483 = vmatpush3.bf16.msra.mxu0 %v1915_v11 }
  0x10   :  { %1484 = vmatprep.subr.bf16.mxu0 %v1859_v10 }
  0x11   :  { %1254 = vmatmul.mubr.msk.bf16.gmra.mrb[4].mxu1 %vm87_vm2, %v1796_v12  ;;  %1250 = vmatmul.mubr.msk.bf16.gmra.mrb[4].mxu0 %vm87_vm2, %v1806_v24 }
  0x12   :  { %1445 = vmatpush3.bf16.msra.mxu1 %v1929_v14  ;;  %202 = vmatprep.mubr.bf16.mxu1 %v1857_v1 }
  0x13   :  { %1446 = vmatprep.subr.bf16.mxu1 %v1859_v10  ;;  %1485 = vmatpush3.bf16.msra.mxu0 %v1929_v14 }
  0x14   :  { %1486 = vmatprep.subr.bf16.mxu0 %v1859_v10  ;;  %170 = vmatprep.mubr.bf16.mxu0 %v1857_v1 }
  0x16   :  { %1447 = vmatpush3.bf16.msra.mxu1 %v1936_v15 }
  0x17   :  { %1448 = vmatprep.subr.bf16.mxu1 %v1859_v10  ;;  %1487 = vmatpush3.bf16.msra.mxu0 %v1936_v15 }
  0x18   :  { %1488 = vmatprep.subr.bf16.mxu0 %v1859_v10 }
  0x19   :  { %1255 = vmatmul.mubr.msk.bf16.gmra.mrb[8].mxu1 %vm87_vm2, %v1799_v16  ;;  %1251 = vmatmul.mubr.msk.bf16.gmra.mrb[8].mxu0 %vm87_vm2, %v1807_v25 }
  0x1a   :  { %1449 = vmatpush3.bf16.msra.mxu1 %v1951_v17  ;;  %210 = vmatprep.mubr.bf16.mxu1 %v1857_v1 }
  0x1b   :  { %1450 = vmatprep.subr.bf16.mxu1 %v1859_v10  ;;  %1489 = vmatpush3.bf16.msra.mxu0 %v1951_v17 }
  0x1c   :  { %1490 = vmatprep.subr.bf16.mxu0 %v1859_v10  ;;  %178 = vmatprep.mubr.bf16.mxu0 %v1857_v1 }
  0x1e   :  { %1451 = vmatpush3.bf16.msra.mxu1 %v1960_v18 }
  0x1f   :  { %1452 = vmatprep.subr.bf16.mxu1 %v1859_v10  ;;  %1491 = vmatpush3.bf16.msra.mxu0 %v1960_v18 }
  0x20   :  { %1492 = vmatprep.subr.bf16.mxu0 %v1859_v10 }
  0x21   :  { %1256 = vmatmul.mubr.msk.bf16.gmra.mrb[12].mxu1 %vm87_vm2, %v1802_v19  ;;  %1252 = vmatmul.mubr.msk.bf16.gmra.mrb[12].mxu0 %vm87_vm2, %v1808_v63 }
  0x22   :  { %1453 = vmatpush3.bf16.msra.mxu1 %v1977_v20  ;;  %1456 = vmatprep.mubr.msk.bf16.mxu1 %vm1860_vm3, %v1859_v10 }
  0x23   :  { %1454 = vmatprep.subr.bf16.mxu1 %v1859_v10  ;;  %1493 = vmatpush3.bf16.msra.mxu0 %v1977_v20 }
  0x24   :  { %1494 = vmatprep.subr.bf16.mxu0 %v1859_v10  ;;  %1496 = vmatprep.mubr.msk.bf16.mxu0 %vm1860_vm3, %v1859_v10 }
  0x26   :  { %1455 = vmatpush3.bf16.msra.mxu1 %v1987_v21 }
  0x27   :  { %1460 = vmatprep.subr.bf16.mxu1 %v1859_v10  ;;  %1495 = vmatpush3.bf16.msra.mxu0 %v1987_v21 }
  0x28   :  { %1520 = vmatprep.subr.bf16.mxu0 %v1859_v10 }
  0x29   :  { %1457 = vmatmul.mubr.bf16.vlgmr.msra.gmra.mrb[16].mxu1 %v239_v23 }
  0x2a   :  { %1461 = vmatpush3.bf16.msra.mxu1 %v1906_v9  ;;  %1476 = vmatprep.mubr.msk.bf16.mxu1 %vm1860_vm3, %v1859_v10 }
  0x2b   :  { %1462 = vmatprep.subr.bf16.mxu1 %v1859_v10 }
  0x2e   :  { %1463 = vmatpush3.bf16.msra.mxu1 %v1915_v11 }
  0x2f   :  { %1464 = vmatprep.subr.bf16.mxu1 %v1859_v10 }
  0x32   :  { %1465 = vmatpush3.bf16.msra.mxu1 %v1929_v14 }
  0x33   :  { %1466 = vmatprep.subr.bf16.mxu1 %v1859_v10 }
  0x36   :  { %1467 = vmatpush3.bf16.msra.mxu1 %v1936_v15 }
  0x37   :  { %1468 = vmatprep.subr.bf16.mxu1 %v1859_v10 }
  0x3a   :  { %1469 = vmatpush3.bf16.msra.mxu1 %v1951_v17 }
  0x3b   :  { %1470 = vmatprep.subr.bf16.mxu1 %v1859_v10 }
  0x3e   :  { %1471 = vmatpush3.bf16.msra.mxu1 %v1960_v18 }
  0x3f   :  { %1472 = vmatprep.subr.bf16.mxu1 %v1859_v10 }
  0x42   :  { %1473 = vmatpush3.bf16.msra.mxu1 %v1977_v20 }
  0x43   :  { %1474 = vmatprep.subr.bf16.mxu1 %v1859_v10 }
  0x46   :  { %1475 = vmatpush3.bf16.msra.mxu1 %v1987_v21 }
  0x47   :  { %1500 = vmatprep.subr.bf16.mxu1 %v1859_v10 }
  0xdc   :  { %v188_v26 = vpop.f32.mrb[0].mxu1  ;;  %v156_v32 = vpop.f32.mrb[0].mxu0 }
  0xdd   :  { %v2031_v27 = vpop.f32.mrb[1].mxu1  ;;  %v158_v33 = vpop.f32.mrb[1].mxu0  ;;  %v246_v55 = vadd.f32 %v2059_v52, %v156_v32 }
  0xde   :  { %v191_v28 = vpop.f32.mrb[2].mxu1  ;;  %v159_v35 = vpop.f32.mrb[2].mxu0 }
  0xdf   :  { %v192_v30 = vpop.f32.mrb[3].mxu1  ;;  %v161_v37 = vpop.f32.mrb[3].mxu0  ;;  %v338_v8 = vadd.f32 %v2059_v52, %v159_v35 }
  0xe0   :  { %v2039_v31 = vadd.f32 %v2036_v29, %v192_v30 }
  0xe4   :  { %v196_v34 = vpop.f32.mrb[4].mxu1  ;;  %v164_v0 = vpop.f32.mrb[4].mxu0 }
  0xe5   :  { %v197_v36 = vpop.f32.mrb[5].mxu1  ;;  %v166_v1 = vpop.f32.mrb[5].mxu0  ;;  %v382_v32 = vadd.f32 %v2059_v52, %v164_v0 }
  0xe6   :  { %v2042_v38 = vadd.f32 %v2036_v29, %v197_v36  ;;  %v199_v39 = vpop.f32.mrb[6].mxu1  ;;  %v2089_v2 = vpop.f32.mrb[6].mxu0  ;;  %v2197_v1 = vld [vmem:[%s2447_s3 + $0x34] ss:$12 sps:$4 sm:$0xff]  }
  0xe7   :  { %v200_v40 = vpop.f32.mrb[7].mxu1  ;;  %v169_v3 = vpop.f32.mrb[7].mxu0 }
  0xe8   :  { %v2045_v41 = vadd.f32 %v2036_v29, %v200_v40 }
  0xec   :  { %v204_v42 = vpop.f32.mrb[8].mxu1  ;;  %v2091_v4 = vpop.f32.mrb[8].mxu0 }
  0xed   :  { %v205_v43 = vpop.f32.mrb[9].mxu1  ;;  %v174_v5 = vpop.f32.mrb[9].mxu0  ;;  %v426_v42 = vadd.f32 %v2059_v52, %v2089_v2  ;;  %v2204_v2 = vld [vmem:[%s2447_s3 + $0x4c] ss:$12 sps:$4 sm:$0xff]  }
  0xee   :  { %v2048_v44 = vadd.f32 %v2036_v29, %v205_v43  ;;  %v207_v45 = vpop.f32.mrb[10].mxu1  ;;  %v2093_v6 = vpop.f32.mrb[10].mxu0 }
  0xef   :  { %v208_v46 = vpop.f32.mrb[11].mxu1  ;;  %v177_v7 = vpop.f32.mrb[11].mxu0 }
  0xf0   :  { %v2051_v47 = vadd.f32 %v2036_v29, %v208_v46 }
  0xf4   :  { %v212_v48 = vpop.f32.mrb[12].mxu1  ;;  %v2114_v25 = vpop.f32.mrb[12].mxu0 }
  0xf5   :  { %v213_v49 = vpop.f32.mrb[13].mxu1  ;;  %v182_v26 = vpop.f32.mrb[13].mxu0  ;;  %v558_v3 = vadd.f32 %v2059_v52, %v2114_v25 }
  0xf6   :  { %v2054_v50 = vadd.f32 %v2036_v29, %v213_v49  ;;  %v215_v51 = vpop.f32.mrb[14].mxu1  ;;  %v2116_v28 = vpop.f32.mrb[14].mxu0 }
  0xf7   :  { %v216_v53 = vpop.f32.mrb[15].mxu1  ;;  %v185_v30 = vpop.f32.mrb[15].mxu0 }
  0xf8   :  { %v2062_v54 = vadd.f32 %v2036_v29, %v216_v53 }
  0xfc   :  { %v329_v56 = vpop.f32.mrb[16].mxu1 }
  0xfd   :  { %v335_v57 = vadd.f32 %v329_v56, %v246_v55  ;;  %v1458_v58 = vpop.f32.mrb[17].mxu1  ;;  %v470_v55 = vadd.f32 %v2059_v52, %v2091_v4 }
  0xfe   :  { %v332_v59 = vpop.f32.mrb[18].mxu1 }
  0xff   :  { %1825 = vtanh.f32 %v335_v57  ;;  %v1459_v60 = vpop.f32.mrb[19].mxu1 }
 0x109   :  { %v1826_v61 = vpop.eup %1825 }
 0x10a   :  { %v337_v62 = vpack.c.bf16 %v1826_v61, %v1826_v61 }
 0x10c   :  { %1477 = vmatmul.mubr.bf16.vlgmr.msra.gmra.mrb[20].mxu1 %v337_v62 }
 0x10d   :  { %1501 = vmatpush3.bf16.msra.mxu1 %v1906_v9  ;;  %1516 = vmatprep.mubr.msk.bf16.mxu1 %vm1860_vm3, %v1859_v10 }
 0x10e   :  { %1502 = vmatprep.subr.bf16.mxu1 %v1859_v10 }
 0x111   :  { %1503 = vmatpush3.bf16.msra.mxu1 %v1915_v11 }
 0x112   :  { %1504 = vmatprep.subr.bf16.mxu1 %v1859_v10 }
 0x115   :  { %1505 = vmatpush3.bf16.msra.mxu1 %v1929_v14 }
 0x116   :  { %1506 = vmatprep.subr.bf16.mxu1 %v1859_v10 }
 0x119   :  { %1507 = vmatpush3.bf16.msra.mxu1 %v1936_v15 }
 0x11a   :  { %1508 = vmatprep.subr.bf16.mxu1 %v1859_v10 }
 0x11d   :  { %1509 = vmatpush3.bf16.msra.mxu1 %v1951_v17 }
 0x11e   :  { %1510 = vmatprep.subr.bf16.mxu1 %v1859_v10 }
 0x121   :  { %1511 = vmatpush3.bf16.msra.mxu1 %v1960_v18 }
 0x122   :  { %1512 = vmatprep.subr.bf16.mxu1 %v1859_v10 }
 0x125   :  { %1513 = vmatpush3.bf16.msra.mxu1 %v1977_v20 }
 0x126   :  { %1514 = vmatprep.subr.bf16.mxu1 %v1859_v10 }
 0x129   :  { %1515 = vmatpush3.bf16.msra.mxu1 %v1987_v21 }
 0x12a   :  { %1540 = vmatprep.subr.bf16.mxu1 %v1859_v10 }
 0x1df   :  { %v373_v12 = vpop.f32.mrb[20].mxu1 }
 0x1e0   :  { %v379_v13 = vadd.f32 %v373_v12, %v338_v8  ;;  %v1478_v16 = vpop.f32.mrb[21].mxu1 }
 0x1e1   :  { %v376_v19 = vpop.f32.mrb[22].mxu1  ;;  %v2224_v16 = vld [vmem:[%s2447_s3 + $0x64] ss:$12 sps:$4 sm:$0xff]  }
 0x1e2   :  { %1827 = vtanh.f32 %v379_v13  ;;  %v1479_v22 = vpop.f32.mrb[23].mxu1  ;;  %v2233_v19 = vld [vmem:[%s2447_s3 + $0x7c] ss:$12 sps:$4 sm:$0xff]  }
 0x1e3   :  { %v2242_v22 = vld [vmem:[%s2447_s3 + $0x94] ss:$12 sps:$4 sm:$0xff]  }
 0x1ec   :  { %v1828_v23 = vpop.eup %1827 }
 0x1ed   :  { %v381_v24 = vpack.c.bf16 %v1828_v23, %v1828_v23  ;;  %v2251_v23 = vld [vmem:[%s2447_s3 + $0xac] ss:$12 sps:$4 sm:$0xff]  }
 0x1ef   :  { %1497 = vmatmul.mubr.bf16.vlgmr.msra.gmra.mrb[16].mxu0 %v381_v24  ;;  %v602_v24 = vadd.f32 %v2059_v52, %v2116_v28 }
 0x1f0   :  { %1521 = vmatpush3.bf16.msra.mxu0 %v1906_v9  ;;  %1536 = vmatprep.mubr.msk.bf16.mxu0 %vm1860_vm3, %v1859_v10 }
 0x1f1   :  { %1522 = vmatprep.subr.bf16.mxu0 %v1859_v10 }
 0x1f4   :  { %1523 = vmatpush3.bf16.msra.mxu0 %v1915_v11 }
 0x1f5   :  { %1524 = vmatprep.subr.bf16.mxu0 %v1859_v10 }
 0x1f8   :  { %1525 = vmatpush3.bf16.msra.mxu0 %v1929_v14 }
 0x1f9   :  { %1526 = vmatprep.subr.bf16.mxu0 %v1859_v10 }
 0x1fc   :  { %1527 = vmatpush3.bf16.msra.mxu0 %v1936_v15 }
 0x1fd   :  { %1528 = vmatprep.subr.bf16.mxu0 %v1859_v10 }
 0x200   :  { %1529 = vmatpush3.bf16.msra.mxu0 %v1951_v17 }
 0x201   :  { %1530 = vmatprep.subr.bf16.mxu0 %v1859_v10 }
 0x204   :  { %1531 = vmatpush3.bf16.msra.mxu0 %v1960_v18 }
 0x205   :  { %1532 = vmatprep.subr.bf16.mxu0 %v1859_v10 }
 0x208   :  { %1533 = vmatpush3.bf16.msra.mxu0 %v1977_v20 }
 0x209   :  { %1534 = vmatprep.subr.bf16.mxu0 %v1859_v10 }
 0x20c   :  { %1535 = vmatpush3.bf16.msra.mxu0 %v1987_v21 }
 0x20d   :  { %1560 = vmatprep.subr.bf16.mxu0 %v1859_v10 }
 0x2c2   :  { %v417_v33 = vpop.f32.mrb[16].mxu0 }
 0x2c3   :  { %v423_v34 = vadd.f32 %v417_v33, %v382_v32  ;;  %v1498_v35 = vpop.f32.mrb[17].mxu0 }
 0x2c4   :  { %v420_v36 = vpop.f32.mrb[18].mxu0 }
 0x2c5   :  { %1829 = vtanh.f32 %v423_v34  ;;  %v1499_v37 = vpop.f32.mrb[19].mxu0 }
 0x2cf   :  { %v1830_v39 = vpop.eup %1829 }
 0x2d0   :  { %v425_v40 = vpack.c.bf16 %v1830_v39, %v1830_v39 }
 0x2d2   :  { %1517 = vmatmul.mubr.bf16.vlgmr.msra.gmra.mrb[24].mxu1 %v425_v40 }
 0x2d3   :  { %1541 = vmatpush3.bf16.msra.mxu1 %v1906_v9  ;;  %1556 = vmatprep.mubr.msk.bf16.mxu1 %vm1860_vm3, %v1859_v10 }
 0x2d4   :  { %1542 = vmatprep.subr.bf16.mxu1 %v1859_v10 }
 0x2d7   :  { %1543 = vmatpush3.bf16.msra.mxu1 %v1915_v11 }
 0x2d8   :  { %1544 = vmatprep.subr.bf16.mxu1 %v1859_v10 }
 0x2db   :  { %1545 = vmatpush3.bf16.msra.mxu1 %v1929_v14 }
 0x2dc   :  { %1546 = vmatprep.subr.bf16.mxu1 %v1859_v10 }
 0x2df   :  { %1547 = vmatpush3.bf16.msra.mxu1 %v1936_v15 }
 0x2e0   :  { %1548 = vmatprep.subr.bf16.mxu1 %v1859_v10 }
 0x2e3   :  { %1549 = vmatpush3.bf16.msra.mxu1 %v1951_v17 }
 0x2e4   :  { %1550 = vmatprep.subr.bf16.mxu1 %v1859_v10 }
 0x2e7   :  { %1551 = vmatpush3.bf16.msra.mxu1 %v1960_v18 }
 0x2e8   :  { %1552 = vmatprep.subr.bf16.mxu1 %v1859_v10 }
 0x2eb   :  { %1553 = vmatpush3.bf16.msra.mxu1 %v1977_v20 }
 0x2ec   :  { %1554 = vmatprep.subr.bf16.mxu1 %v1859_v10 }
 0x2ef   :  { %1555 = vmatpush3.bf16.msra.mxu1 %v1987_v21 }
 0x2f0   :  { %1580 = vmatprep.subr.bf16.mxu1 %v1859_v10 }
 0x3a5   :  { %v461_v43 = vpop.f32.mrb[24].mxu1 }
 0x3a6   :  { %v467_v45 = vadd.f32 %v461_v43, %v426_v42  ;;  %v1518_v46 = vpop.f32.mrb[25].mxu1 }
 0x3a7   :  { %v464_v48 = vpop.f32.mrb[26].mxu1 }
 0x3a8   :  { %1831 = vtanh.f32 %v467_v45  ;;  %v1519_v49 = vpop.f32.mrb[27].mxu1 }
 0x3b2   :  { %v1832_v51 = vpop.eup %1831 }
 0x3b3   :  { %v469_v53 = vpack.c.bf16 %v1832_v51, %v1832_v51 }
 0x3b5   :  { %1537 = vmatmul.mubr.bf16.vlgmr.msra.gmra.mrb[20].mxu0 %v469_v53 }
 0x3b6   :  { %1561 = vmatpush3.bf16.msra.mxu0 %v1906_v9  ;;  %1576 = vmatprep.mubr.msk.bf16.mxu0 %vm1860_vm3, %v1859_v10 }
 0x3b7   :  { %1562 = vmatprep.subr.bf16.mxu0 %v1859_v10 }
 0x3ba   :  { %1563 = vmatpush3.bf16.msra.mxu0 %v1915_v11 }
 0x3bb   :  { %1564 = vmatprep.subr.bf16.mxu0 %v1859_v10 }
 0x3be   :  { %1565 = vmatpush3.bf16.msra.mxu0 %v1929_v14 }
 0x3bf   :  { %1566 = vmatprep.subr.bf16.mxu0 %v1859_v10 }
 0x3c2   :  { %1567 = vmatpush3.bf16.msra.mxu0 %v1936_v15 }
 0x3c3   :  { %1568 = vmatprep.subr.bf16.mxu0 %v1859_v10 }
 0x3c6   :  { %1569 = vmatpush3.bf16.msra.mxu0 %v1951_v17 }
 0x3c7   :  { %1570 = vmatprep.subr.bf16.mxu0 %v1859_v10 }
 0x3ca   :  { %1571 = vmatpush3.bf16.msra.mxu0 %v1960_v18 }
 0x3cb   :  { %1572 = vmatprep.subr.bf16.mxu0 %v1859_v10 }
 0x3ce   :  { %1573 = vmatpush3.bf16.msra.mxu0 %v1977_v20 }
 0x3cf   :  { %1574 = vmatprep.subr.bf16.mxu0 %v1859_v10 }
 0x3d2   :  { %1575 = vmatpush3.bf16.msra.mxu0 %v1987_v21 }
 0x3d3   :  { %1600 = vmatprep.subr.bf16.mxu0 %v1859_v10 }
 0x488   :  { %v505_v56 = vpop.f32.mrb[20].mxu0 }
 0x489   :  { %v511_v57 = vadd.f32 %v505_v56, %v470_v55  ;;  %v1538_v58 = vpop.f32.mrb[21].mxu0 }
 0x48a   :  { %v508_v59 = vpop.f32.mrb[22].mxu0 }
 0x48b   :  { %1833 = vtanh.f32 %v511_v57  ;;  %v1539_v60 = vpop.f32.mrb[23].mxu0 }
 0x495   :  { %v1834_v61 = vpop.eup %1833 }
 0x496   :  { %v513_v62 = vpack.c.bf16 %v1834_v61, %v1834_v61 }
 0x498   :  { %1557 = vmatmul.mubr.bf16.vlgmr.msra.gmra.mrb[28].mxu1 %v513_v62 }
 0x499   :  { %1581 = vmatpush3.bf16.msra.mxu1 %v1906_v9  ;;  %1596 = vmatprep.mubr.msk.bf16.mxu1 %vm1860_vm3, %v1859_v10  ;;  %v514_v9 = vadd.f32 %v2059_v52, %v2093_v6  ;;  %v668_v52 = vadd.f32 %v2036_v29, %v2031_v27 }
 0x49a   :  { %1582 = vmatprep.subr.bf16.mxu1 %v1859_v10 }
 0x49d   :  { %1583 = vmatpush3.bf16.msra.mxu1 %v1915_v11 }
 0x49e   :  { %1584 = vmatprep.subr.bf16.mxu1 %v1859_v10 }
 0x4a1   :  { %1585 = vmatpush3.bf16.msra.mxu1 %v1929_v14 }
 0x4a2   :  { %1586 = vmatprep.subr.bf16.mxu1 %v1859_v10 }
 0x4a5   :  { %1587 = vmatpush3.bf16.msra.mxu1 %v1936_v15 }
 0x4a6   :  { %1588 = vmatprep.subr.bf16.mxu1 %v1859_v10 }
 0x4a9   :  { %1589 = vmatpush3.bf16.msra.mxu1 %v1951_v17 }
 0x4aa   :  { %1590 = vmatprep.subr.bf16.mxu1 %v1859_v10 }
 0x4ad   :  { %1591 = vmatpush3.bf16.msra.mxu1 %v1960_v18 }
 0x4ae   :  { %1592 = vmatprep.subr.bf16.mxu1 %v1859_v10 }
 0x4b1   :  { %1593 = vmatpush3.bf16.msra.mxu1 %v1977_v20  ;;  %v2184_v20 = vld [vmem:[%s2447_s3 + $0x4] ss:$12 sps:$4 sm:$0xff]  }
 0x4b2   :  { %1594 = vmatprep.subr.bf16.mxu1 %v1859_v10 }
 0x4b5   :  { %1595 = vmatpush3.bf16.msra.mxu1 %v1987_v21  ;;  %v2190_v21 = vld [vmem:[%s2447_s3 + $0x1c] ss:$12 sps:$4 sm:$0xff]  }
 0x4b6   :  { %1620 = vmatprep.subr.bf16.mxu1 %v1859_v10 }
 0x56b   :  { %v549_v11 = vpop.f32.mrb[28].mxu1 }
 0x56c   :  { %v555_v14 = vadd.f32 %v549_v11, %v514_v9  ;;  %v1558_v15 = vpop.f32.mrb[29].mxu1 }
 0x56d   :  { %v552_v17 = vpop.f32.mrb[30].mxu1 }
 0x56e   :  { %1835 = vtanh.f32 %v555_v14  ;;  %v1559_v63 = vpop.f32.mrb[31].mxu1 }
 0x578   :  { %v1836_v18 = vpop.eup %1835 }
 0x579   :  { %v557_v0 = vpack.c.bf16 %v1836_v18, %v1836_v18 }
 0x57b   :  { %1577 = vmatmul.mubr.bf16.vlgmr.msra.gmra.mrb[24].mxu0 %v557_v0 }
 0x57c   :  { %1616 = vmatprep.mubr.msk.bf16.mxu0 %vm1860_vm3, %v1859_v10  ;;  %1601 = vmatpush3.bf16.msra.mxu0 %v2184_v20 }
 0x57d   :  { %1602 = vmatprep.subr.bf16.mxu0 %v1859_v10 }
 0x580   :  { %1603 = vmatpush3.bf16.msra.mxu0 %v2190_v21 }
 0x581   :  { %1604 = vmatprep.subr.bf16.mxu0 %v1859_v10 }
 0x584   :  { %1605 = vmatpush3.bf16.msra.mxu0 %v2197_v1 }
 0x585   :  { %1606 = vmatprep.subr.bf16.mxu0 %v1859_v10 }
 0x588   :  { %1607 = vmatpush3.bf16.msra.mxu0 %v2204_v2 }
 0x589   :  { %1608 = vmatprep.subr.bf16.mxu0 %v1859_v10 }
 0x58c   :  { %1609 = vmatpush3.bf16.msra.mxu0 %v2224_v16 }
 0x58d   :  { %1610 = vmatprep.subr.bf16.mxu0 %v1859_v10 }
 0x590   :  { %1611 = vmatpush3.bf16.msra.mxu0 %v2233_v19 }
 0x591   :  { %1612 = vmatprep.subr.bf16.mxu0 %v1859_v10 }
 0x594   :  { %1613 = vmatpush3.bf16.msra.mxu0 %v2242_v22 }
 0x595   :  { %1614 = vmatprep.subr.bf16.mxu0 %v1859_v10 }
 0x598   :  { %1615 = vmatpush3.bf16.msra.mxu0 %v2251_v23 }
 0x599   :  { %1640 = vmatprep.subr.bf16.mxu0 %v1859_v10 }
 0x64e   :  { %v593_v4 = vpop.f32.mrb[24].mxu0 }
 0x64f   :  { %v599_v5 = vadd.f32 %v593_v4, %v558_v3  ;;  %v1578_v6 = vpop.f32.mrb[25].mxu0 }
 0x650   :  { %v596_v7 = vpop.f32.mrb[26].mxu0 }
 0x651   :  { %1837 = vtanh.f32 %v599_v5  ;;  %v1579_v8 = vpop.f32.mrb[27].mxu0 }
 0x65b   :  { %v1838_v12 = vpop.eup %1837 }
 0x65c   :  { %v601_v13 = vpack.c.bf16 %v1838_v12, %v1838_v12  ;;  %v1820_v12 = vld [vmem:[%s2447_s3 + $0x50] ss:$12 sps:$4 sm:$0xff]  }
 0x65e   :  { %1597 = vmatmul.mubr.bf16.vlgmr.msra.gmra.mrb[32].mxu1 %v601_v13  ;;  %v1821_v13 = vld [vmem:[%s2447_s3 + $0x68] ss:$12 sps:$4 sm:$0xff]  }
 0x65f   :  { %1621 = vmatpush3.bf16.msra.mxu1 %v2184_v20  ;;  %1636 = vmatprep.mubr.msk.bf16.mxu1 %vm1860_vm3, %v1859_v10 }
 0x660   :  { %1622 = vmatprep.subr.bf16.mxu1 %v1859_v10 }
 0x663   :  { %1623 = vmatpush3.bf16.msra.mxu1 %v2190_v21 }
 0x664   :  { %1624 = vmatprep.subr.bf16.mxu1 %v1859_v10 }
 0x667   :  { %1625 = vmatpush3.bf16.msra.mxu1 %v2197_v1 }
 0x668   :  { %1626 = vmatprep.subr.bf16.mxu1 %v1859_v10 }
 0x66b   :  { %1627 = vmatpush3.bf16.msra.mxu1 %v2204_v2 }
 0x66c   :  { %1628 = vmatprep.subr.bf16.mxu1 %v1859_v10 }
 0x66f   :  { %1629 = vmatpush3.bf16.msra.mxu1 %v2224_v16 }
 0x670   :  { %1630 = vmatprep.subr.bf16.mxu1 %v1859_v10 }
 0x673   :  { %1631 = vmatpush3.bf16.msra.mxu1 %v2233_v19 }
 0x674   :  { %1632 = vmatprep.subr.bf16.mxu1 %v1859_v10 }
 0x677   :  { %1633 = vmatpush3.bf16.msra.mxu1 %v2242_v22 }
 0x678   :  { %1634 = vmatprep.subr.bf16.mxu1 %v1859_v10 }
 0x67b   :  { %1635 = vmatpush3.bf16.msra.mxu1 %v2251_v23 }
 0x67c   :  { %1660 = vmatprep.subr.bf16.mxu1 %v1859_v10 }
 0x731   :  { %v637_v25 = vpop.f32.mrb[32].mxu1 }
 0x732   :  { %v643_v26 = vadd.f32 %v637_v25, %v602_v24  ;;  %v1598_v30 = vpop.f32.mrb[33].mxu1 }
 0x733   :  { %v640_v32 = vpop.f32.mrb[34].mxu1 }
 0x734   :  { %1839 = vtanh.f32 %v643_v26  ;;  %v1599_v33 = vpop.f32.mrb[35].mxu1 }
 0x73e   :  { %v1840_v34 = vpop.eup %1839 }
 0x73f   :  { %v645_v35 = vpack.c.bf16 %v1840_v34, %v1840_v34 }
 0x741   :  { %1617 = vmatmul.mubr.bf16.vlgmr.msra.gmra.mrb[28].mxu0 %v645_v35 }
 0x742   :  { %1641 = vmatpush3.bf16.msra.mxu0 %v2184_v20  ;;  %1656 = vmatprep.mubr.msk.bf16.mxu0 %vm1860_vm3, %v1859_v10 }
 0x743   :  { %1642 = vmatprep.subr.bf16.mxu0 %v1859_v10 }
 0x746   :  { %1643 = vmatpush3.bf16.msra.mxu0 %v2190_v21 }
 0x747   :  { %1644 = vmatprep.subr.bf16.mxu0 %v1859_v10 }
 0x74a   :  { %1645 = vmatpush3.bf16.msra.mxu0 %v2197_v1 }
 0x74b   :  { %1646 = vmatprep.subr.bf16.mxu0 %v1859_v10 }
 0x74e   :  { %1647 = vmatpush3.bf16.msra.mxu0 %v2204_v2 }
 0x74f   :  { %1648 = vmatprep.subr.bf16.mxu0 %v1859_v10 }
 0x752   :  { %1649 = vmatpush3.bf16.msra.mxu0 %v2224_v16 }
 0x753   :  { %1650 = vmatprep.subr.bf16.mxu0 %v1859_v10 }
 0x756   :  { %1651 = vmatpush3.bf16.msra.mxu0 %v2233_v19 }
 0x757   :  { %1652 = vmatprep.subr.bf16.mxu0 %v1859_v10 }
 0x75a   :  { %1653 = vmatpush3.bf16.msra.mxu0 %v2242_v22 }
 0x75b   :  { %1654 = vmatprep.subr.bf16.mxu0 %v1859_v10 }
 0x75e   :  { %1655 = vmatpush3.bf16.msra.mxu0 %v2251_v23 }
 0x75f   :  { %1680 = vmatprep.subr.bf16.mxu0 %v1859_v10 }
 0x814   :  { %v751_v28 = vpop.f32.mrb[28].mxu0 }
 0x815   :  { %v757_v36 = vadd.f32 %v751_v28, %v668_v52  ;;  %v1618_v37 = vpop.f32.mrb[29].mxu0 }
 0x816   :  { %v754_v39 = vpop.f32.mrb[30].mxu0 }
 0x817   :  { %1841 = vtanh.f32 %v757_v36  ;;  %v1619_v40 = vpop.f32.mrb[31].mxu0  ;;  %v1275_v36 = vld [vmem:[%s2449_s4 + $0x2] ss:$0 sm:$0xff] }
 0x821   :  { %v1842_v42 = vpop.eup %1841 }
 0x822   :  { %v2279_v43 = vpack.c.bf16 %v1842_v42, %v1842_v42 }
 0x824   :  { %1637 = vmatmul.mubr.bf16.vlgmr.msra.gmra.mrb[36].mxu1 %v2279_v43 }
 0x825   :  { %1661 = vmatpush3.bf16.msra.mxu1 %v2184_v20  ;;  %1676 = vmatprep.mubr.msk.bf16.mxu1 %vm1860_vm3, %v1859_v10 }
 0x826   :  { %1662 = vmatprep.subr.bf16.mxu1 %v1859_v10 }
 0x829   :  { %1663 = vmatpush3.bf16.msra.mxu1 %v2190_v21 }
 0x82a   :  { %1664 = vmatprep.subr.bf16.mxu1 %v1859_v10 }
 0x82d   :  { %1665 = vmatpush3.bf16.msra.mxu1 %v2197_v1 }
 0x82e   :  { %1666 = vmatprep.subr.bf16.mxu1 %v1859_v10 }
 0x831   :  { %1667 = vmatpush3.bf16.msra.mxu1 %v2204_v2 }
 0x832   :  { %1668 = vmatprep.subr.bf16.mxu1 %v1859_v10 }
 0x835   :  { %1669 = vmatpush3.bf16.msra.mxu1 %v2224_v16 }
 0x836   :  { %1670 = vmatprep.subr.bf16.mxu1 %v1859_v10 }
 0x839   :  { %1671 = vmatpush3.bf16.msra.mxu1 %v2233_v19 }
 0x83a   :  { %1672 = vmatprep.subr.bf16.mxu1 %v1859_v10 }
 0x83d   :  { %1673 = vmatpush3.bf16.msra.mxu1 %v2242_v22 }
 0x83e   :  { %1674 = vmatprep.subr.bf16.mxu1 %v1859_v10 }
 0x841   :  { %1675 = vmatpush3.bf16.msra.mxu1 %v2251_v23 }
 0x842   :  { %1700 = vmatprep.subr.bf16.mxu1 %v1859_v10 }
 0x8f7   :  { %v795_v27 = vpop.f32.mrb[36].mxu1 }
 0x8f8   :  { %v801_v29 = vadd.f32 %v795_v27, %v2039_v31  ;;  %v1638_v45 = vpop.f32.mrb[37].mxu1 }
 0x8f9   :  { %v798_v46 = vpop.f32.mrb[38].mxu1 }
 0x8fa   :  { %1843 = vtanh.f32 %v801_v29  ;;  %v1639_v48 = vpop.f32.mrb[39].mxu1 }
 0x904   :  { %v1844_v49 = vpop.eup %1843 }
 0x905   :  { %v2301_v51 = vpack.c.bf16 %v1844_v49, %v1844_v49 }
 0x907   :  { %1657 = vmatmul.mubr.bf16.vlgmr.msra.gmra.mrb[32].mxu0 %v2301_v51  ;;  %v1069_v5 = vrot.slane %v2301_v51, 4 }
 0x908   :  { %1681 = vmatpush3.bf16.msra.mxu0 %v2184_v20  ;;  %1696 = vmatprep.mubr.msk.bf16.mxu0 %vm1860_vm3, %v1859_v10 }
 0x909   :  { %1682 = vmatprep.subr.bf16.mxu0 %v1859_v10  ;;  %v1078_v8 = vsel %vm112_vm0, %v2279_v43, %v1069_v5 }
 0x90c   :  { %1683 = vmatpush3.bf16.msra.mxu0 %v2190_v21 }
 0x90d   :  { %1684 = vmatprep.subr.bf16.mxu0 %v1859_v10 }
 0x910   :  { %1685 = vmatpush3.bf16.msra.mxu0 %v2197_v1 }
 0x911   :  { %1686 = vmatprep.subr.bf16.mxu0 %v1859_v10 }
 0x914   :  { %1687 = vmatpush3.bf16.msra.mxu0 %v2204_v2 }
 0x915   :  { %1688 = vmatprep.subr.bf16.mxu0 %v1859_v10 }
 0x918   :  { %1689 = vmatpush3.bf16.msra.mxu0 %v2224_v16 }
 0x919   :  { %1690 = vmatprep.subr.bf16.mxu0 %v1859_v10 }
 0x91c   :  { %1691 = vmatpush3.bf16.msra.mxu0 %v2233_v19 }
 0x91d   :  { %1692 = vmatprep.subr.bf16.mxu0 %v1859_v10 }
 0x920   :  { %1693 = vmatpush3.bf16.msra.mxu0 %v2242_v22 }
 0x921   :  { %1694 = vmatprep.subr.bf16.mxu0 %v1859_v10 }
 0x924   :  { %1695 = vmatpush3.bf16.msra.mxu0 %v2251_v23 }
 0x925   :  { %1720 = vmatprep.subr.bf16.mxu0 %v1859_v10 }
 0x9da   :  { %v839_v31 = vpop.f32.mrb[32].mxu0 }
 0x9db   :  { %v845_v53 = vadd.f32 %v839_v31, %v2042_v38  ;;  %v1658_v55 = vpop.f32.mrb[33].mxu0 }
 0x9dc   :  { %v842_v56 = vpop.f32.mrb[34].mxu0 }
 0x9dd   :  { %1845 = vtanh.f32 %v845_v53  ;;  %v1659_v57 = vpop.f32.mrb[35].mxu0 }
 0x9e7   :  { %v1846_v58 = vpop.eup %1845 }
 0x9e8   :  { %v2323_v59 = vpack.c.bf16 %v1846_v58, %v1846_v58 }
 0x9ea   :  { %1677 = vmatmul.mubr.bf16.vlgmr.msra.gmra.mrb[40].mxu1 %v2323_v59 }
 0x9eb   :  { %1701 = vmatpush3.bf16.msra.mxu1 %v2184_v20  ;;  %1716 = vmatprep.mubr.msk.bf16.mxu1 %vm1860_vm3, %v1859_v10 }
 0x9ec   :  { %1702 = vmatprep.subr.bf16.mxu1 %v1859_v10 }
 0x9ef   :  { %1703 = vmatpush3.bf16.msra.mxu1 %v2190_v21 }
 0x9f0   :  { %1704 = vmatprep.subr.bf16.mxu1 %v1859_v10 }
 0x9f3   :  { %1705 = vmatpush3.bf16.msra.mxu1 %v2197_v1 }
 0x9f4   :  { %1706 = vmatprep.subr.bf16.mxu1 %v1859_v10 }
 0x9f7   :  { %1707 = vmatpush3.bf16.msra.mxu1 %v2204_v2 }
 0x9f8   :  { %1708 = vmatprep.subr.bf16.mxu1 %v1859_v10 }
 0x9fb   :  { %1709 = vmatpush3.bf16.msra.mxu1 %v2224_v16 }
 0x9fc   :  { %1710 = vmatprep.subr.bf16.mxu1 %v1859_v10 }
 0x9ff   :  { %1711 = vmatpush3.bf16.msra.mxu1 %v2233_v19 }
 0xa00   :  { %1712 = vmatprep.subr.bf16.mxu1 %v1859_v10 }
 0xa03   :  { %1713 = vmatpush3.bf16.msra.mxu1 %v2242_v22 }
 0xa04   :  { %1714 = vmatprep.subr.bf16.mxu1 %v1859_v10 }
 0xa07   :  { %1715 = vmatpush3.bf16.msra.mxu1 %v2251_v23 }
 0xa08   :  { %1740 = vmatprep.subr.bf16.mxu1 %v1859_v10 }
 0xabd   :  { %v883_v38 = vpop.f32.mrb[40].mxu1 }
 0xabe   :  { %v889_v60 = vadd.f32 %v883_v38, %v2045_v41  ;;  %v1678_v61 = vpop.f32.mrb[41].mxu1 }
 0xabf   :  { %v886_v62 = vpop.f32.mrb[42].mxu1 }
 0xac0   :  { %1847 = vtanh.f32 %v889_v60  ;;  %v1679_v9 = vpop.f32.mrb[43].mxu1 }
 0xaca   :  { %v1848_v11 = vpop.eup %1847 }
 0xacb   :  { %v2345_v14 = vpack.c.bf16 %v1848_v11, %v1848_v11 }
 0xacd   :  { %1697 = vmatmul.mubr.bf16.vlgmr.msra.gmra.mrb[36].mxu0 %v2345_v14 }
 0xace   :  { %1721 = vmatpush3.bf16.msra.mxu0 %v2184_v20  ;;  %1736 = vmatprep.mubr.msk.bf16.mxu0 %vm1860_vm3, %v1859_v10 }
 0xacf   :  { %1722 = vmatprep.subr.bf16.mxu0 %v1859_v10 }
 0xad2   :  { %1723 = vmatpush3.bf16.msra.mxu0 %v2190_v21 }
 0xad3   :  { %1724 = vmatprep.subr.bf16.mxu0 %v1859_v10 }
 0xad6   :  { %1725 = vmatpush3.bf16.msra.mxu0 %v2197_v1 }
 0xad7   :  { %1726 = vmatprep.subr.bf16.mxu0 %v1859_v10 }
 0xada   :  { %1727 = vmatpush3.bf16.msra.mxu0 %v2204_v2 }
 0xadb   :  { %1728 = vmatprep.subr.bf16.mxu0 %v1859_v10 }
 0xade   :  { %1729 = vmatpush3.bf16.msra.mxu0 %v2224_v16 }
 0xadf   :  { %1730 = vmatprep.subr.bf16.mxu0 %v1859_v10 }
 0xae2   :  { %1731 = vmatpush3.bf16.msra.mxu0 %v2233_v19 }
 0xae3   :  { %1732 = vmatprep.subr.bf16.mxu0 %v1859_v10 }
 0xae6   :  { %1733 = vmatpush3.bf16.msra.mxu0 %v2242_v22 }
 0xae7   :  { %1734 = vmatprep.subr.bf16.mxu0 %v1859_v10 }
 0xaea   :  { %1735 = vmatpush3.bf16.msra.mxu0 %v2251_v23 }
 0xba0   :  { %v927_v41 = vpop.f32.mrb[36].mxu0 }
 0xba1   :  { %v933_v15 = vadd.f32 %v927_v41, %v2048_v44  ;;  %v1698_v17 = vpop.f32.mrb[37].mxu0  ;;  %v1817_v44 = vld [vmem:[%s2447_s3 + $0x8] ss:$12 sps:$4 sm:$0xff]  }
 0xba2   :  { %v930_v63 = vpop.f32.mrb[38].mxu0  ;;  %1760 = vmatprep.subr.bf16.mxu0 %v1817_v44 }
 0xba3   :  { %1849 = vtanh.f32 %v933_v15  ;;  %v1699_v18 = vpop.f32.mrb[39].mxu0 }
 0xbad   :  { %v1850_v0 = vpop.eup %1849 }
 0xbae   :  { %v935_v3 = vpack.c.bf16 %v1850_v0, %v1850_v0 }
 0xbb0   :  { %1717 = vmatmul.mubr.bf16.vlgmr.msra.gmra.mrb[44].mxu1 %v935_v3 }
 0xbb1   :  { %1741 = vmatpush3.bf16.msra.mxu1 %v2184_v20  ;;  %1756 = vmatprep.mubr.msk.bf16.mxu1 %vm1860_vm3, %v1859_v10 }
 0xbb2   :  { %1742 = vmatprep.subr.bf16.mxu1 %v1859_v10 }
 0xbb5   :  { %1743 = vmatpush3.bf16.msra.mxu1 %v2190_v21 }
 0xbb6   :  { %1744 = vmatprep.subr.bf16.mxu1 %v1859_v10 }
 0xbb9   :  { %1745 = vmatpush3.bf16.msra.mxu1 %v2197_v1 }
 0xbba   :  { %1746 = vmatprep.subr.bf16.mxu1 %v1859_v10 }
 0xbbd   :  { %1747 = vmatpush3.bf16.msra.mxu1 %v2204_v2 }
 0xbbe   :  { %1748 = vmatprep.subr.bf16.mxu1 %v1859_v10 }
 0xbc1   :  { %1749 = vmatpush3.bf16.msra.mxu1 %v2224_v16  ;;  %v1822_v16 = vld [vmem:[%s2447_s3 + $0x80] ss:$12 sps:$4 sm:$0xff]  }
 0xbc2   :  { %1750 = vmatprep.subr.bf16.mxu1 %v1859_v10 }
 0xbc5   :  { %1751 = vmatpush3.bf16.msra.mxu1 %v2233_v19  ;;  %v1823_v19 = vld [vmem:[%s2447_s3 + $0x98] ss:$12 sps:$4 sm:$0xff]  }
 0xbc6   :  { %1752 = vmatprep.subr.bf16.mxu1 %v1859_v10 }
 0xbc9   :  { %1753 = vmatpush3.bf16.msra.mxu1 %v2242_v22  ;;  %v1824_v22 = vld [vmem:[%s2447_s3 + $0xb0] ss:$12 sps:$4 sm:$0xff]  }
 0xbca   :  { %1754 = vmatprep.subr.bf16.mxu1 %v1859_v10  ;;  %v1818_v10 = vld [vmem:[%s2447_s3 + $0x20] ss:$12 sps:$4 sm:$0xff]  }
 0xbcd   :  { %1755 = vmatpush3.bf16.msra.mxu1 %v2251_v23  ;;  %v1071_v23 = vrot.slane %v2345_v14, 4 }
 0xbcf   :  { %v1082_v25 = vsel %vm112_vm0, %v2323_v59, %v1071_v23 }
 0xc83   :  { %v971_v20 = vpop.f32.mrb[44].mxu1 }
 0xc84   :  { %v977_v21 = vadd.f32 %v971_v20, %v2051_v47  ;;  %v1718_v1 = vpop.f32.mrb[45].mxu1  ;;  %v1819_v47 = vld [vmem:[%s2447_s3 + $0x38] ss:$12 sps:$4 sm:$0xff]  }
 0xc85   :  { %v974_v2 = vpop.f32.mrb[46].mxu1 }
 0xc86   :  { %1851 = vtanh.f32 %v977_v21  ;;  %v1719_v4 = vpop.f32.mrb[47].mxu1 }
 0xc90   :  { %v1852_v6 = vpop.eup %1851 }
 0xc91   :  { %v979_v7 = vpack.c.bf16 %v1852_v6, %v1852_v6 }
 0xc93   :  { %1737 = vmatmul.mubr.bf16.vlgmr.msra.gmra.mrb[40].mxu0 %v979_v7  ;;  %v1073_v24 = vrot.slane %v979_v7, 4 }
 0xc94   :  { %1761 = vmatpush3.bf16.msra.mxu0 %v1817_v44  ;;  %1776 = vmatprep.mubr.bf16.mxu0 %v1078_v8 }
 0xc95   :  { %1762 = vmatprep.subr.bf16.mxu0 %v1818_v10  ;;  %v1086_v26 = vsel %vm112_vm0, %v935_v3, %v1073_v24 }
 0xc98   :  { %1763 = vmatpush3.bf16.msra.mxu0 %v1818_v10 }
 0xc99   :  { %1764 = vmatprep.subr.bf16.mxu0 %v1819_v47 }
 0xc9c   :  { %1765 = vmatpush3.bf16.msra.mxu0 %v1819_v47 }
 0xc9d   :  { %1766 = vmatprep.subr.bf16.mxu0 %v1820_v12 }
 0xca0   :  { %1767 = vmatpush3.bf16.msra.mxu0 %v1820_v12 }
 0xca1   :  { %1768 = vmatprep.subr.bf16.mxu0 %v1821_v13 }
 0xca4   :  { %1769 = vmatpush3.bf16.msra.mxu0 %v1821_v13 }
 0xca5   :  { %1770 = vmatprep.subr.bf16.mxu0 %v1822_v16 }
 0xca8   :  { %1771 = vmatpush3.bf16.msra.mxu0 %v1822_v16 }
 0xca9   :  { %1772 = vmatprep.subr.bf16.mxu0 %v1823_v19 }
 0xcac   :  { %1773 = vmatpush3.bf16.msra.mxu0 %v1823_v19 }
 0xcad   :  { %1774 = vmatprep.subr.bf16.mxu0 %v1824_v22 }
 0xcb0   :  { %1775 = vmatpush3.bf16.msra.mxu0 %v1824_v22 }
 0xcb3   :  { %1777 = vmatmul.mubr.bf16.vlgmr.msra.gmra.mrb[44].mxu0 %v1082_v25 }
 0xcb4   :  { %1780 = vmatprep.mubr.bf16.mxu0 %v1086_v26 }
 0xd66   :  { %v1015_v30 = vpop.f32.mrb[40].mxu0 }
 0xd67   :  { %v1021_v32 = vadd.f32 %v1015_v30, %v2054_v50  ;;  %v1738_v33 = vpop.f32.mrb[41].mxu0 }
 0xd68   :  { %v1018_v34 = vpop.f32.mrb[42].mxu0 }
 0xd69   :  { %1853 = vtanh.f32 %v1021_v32  ;;  %v1739_v35 = vpop.f32.mrb[43].mxu0 }
 0xd73   :  { %v1854_v52 = vpop.eup %1853 }
 0xd74   :  { %v1023_v28 = vpack.c.bf16 %v1854_v52, %v1854_v52 }
 0xd76   :  { %1757 = vmatmul.mubr.bf16.vlgmr.msra.gmra.mrb[48].mxu1 %v1023_v28 }
 0xd86   :  { %v1778_v37 = vpop.f32.mrb[44].mxu0 }
 0xd87   :  { %v1205_v39 = vadd.f32 %v1778_v37, %v1275_v36  ;;  %v1196_v40 = vpop.f32.mrb[45].mxu0 }
 0xd88   :  { %v1197_v42 = vadd.f32 %v1275_v36, %v1196_v40  ;;  %v1779_v43 = vpop.f32.mrb[46].mxu0 }
 0xd89   :  { %1229 = vst [vmem:[%s2450_s5 + $0x10] sm:$0xff] %v1205_v39  ;;  %v1208_v50 = vadd.f32 %v1779_v43, %v1275_v36  ;;  %v1199_v27 = vpop.f32.mrb[47].mxu0 }
 0xd8a   :  { %1227 = vst [vmem:[%s2450_s5] sm:$0xff] %v1197_v42  ;;  %v1200_v29 = vadd.f32 %v1275_v36, %v1199_v27 }
 0xd8b   :  { %1230 = vst [vmem:[%s2450_s5 + $0x18] sm:$0xff] %v1208_v50 }
 0xd8c   :  { %1228 = vst [vmem:[%s2450_s5 + $0x8] sm:$0xff] %v1200_v29 }
 0xe49   :  { %v1059_v45 = vpop.f32.mrb[48].mxu1 }
 0xe4a   :  { %v1065_v46 = vadd.f32 %v1059_v45, %v2062_v54  ;;  %v1758_v48 = vpop.f32.mrb[49].mxu1 }
 0xe4b   :  { %v1062_v49 = vpop.f32.mrb[50].mxu1 }
 0xe4c   :  { %1855 = vtanh.f32 %v1065_v46  ;;  %v1759_v51 = vpop.f32.mrb[51].mxu1 }
 0xe56   :  { %v1856_v31 = vpop.eup %1855 }
 0xe57   :  { %v1067_v53 = vpack.c.bf16 %v1856_v31, %v1856_v31 }
 0xe59   :  { %v1075_v55 = vrot.slane %v1067_v53, 4 }
 0xe5b   :  { %v1090_v56 = vsel %vm112_vm0, %v1023_v28, %v1075_v55 }
 0xe5c   :  { %1781 = vmatmul.mubr.bf16.gmra.mrb[48].mxu0 %v1090_v56 }
 0xf2f   :  { %v1782_v57 = vpop.f32.mrb[48].mxu0 }
 0xf30   :  { %v1221_v58 = vadd.f32 %v1782_v57, %v1275_v36  ;;  %v1212_v59 = vpop.f32.mrb[49].mxu0 }
 0xf31   :  { %v1213_v38 = vadd.f32 %v1275_v36, %v1212_v59  ;;  %v1783_v60 = vpop.f32.mrb[50].mxu0 }
 0xf32   :  { %1233 = vst [vmem:[%s2450_s5 + $0x30] sm:$0xff] %v1221_v58  ;;  %v1224_v54 = vadd.f32 %v1783_v60, %v1275_v36  ;;  %v1215_v61 = vpop.f32.mrb[51].mxu0 }
 0xf33   :  { %1231 = vst [vmem:[%s2450_s5 + $0x20] sm:$0xff] %v1213_v38  ;;  %v1216_v62 = vadd.f32 %v1275_v36, %v1215_v61 }
 0xf34   :  { %1234 = vst [vmem:[%s2450_s5 + $0x38] sm:$0xff] %v1224_v54 }
 0xf35   :  { %1232 = vst [vmem:[%s2450_s5 + $0x28] sm:$0xff] %v1216_v62 }

</bundles_post_ra>
